<compile_context>
chip_gen: v7x
topology: tpu7x:2x2x1
jax: 0.10.0
libtpu: 0.0.40
codegen_flags: <defaults>
</compile_context>

<pallas_src>
import numpy as np
import jax
import jax.numpy as jnp
from jax.experimental import pallas as pl
from jax.experimental.pallas import tpu as pltpu


def _round_up(x, m):
    return ((x + m - 1) // m) * m


def _bsr_spmm_kernel(kblk_ref, nnzb_ref, graph_ref, feat_ref, out_ref):
    """One (tm, tf) output tile, accumulated in-place (f32) over the nonzero
    K-blocks of its row-block.  Grid = (row_blocks, feat_blocks, max_nnz_slots).
    kblk_ref / nnzb_ref are the scalar-prefetched block-CSR tables in SMEM."""
    i = pl.program_id(0)
    s = pl.program_id(2)

    @pl.when(s == 0)
    def _():
        out_ref[...] = jnp.zeros_like(out_ref)

    # Slots >= nnzb[i] are padding (they repeat the previous block index so
    # Pallas skips the re-DMA); mask them out of the accumulation.
    @pl.when(s < nnzb_ref[i])
    def _():
        out_ref[...] += jnp.dot(
            graph_ref[...], feat_ref[...], preferred_element_type=jnp.float32
        )


def _block_structure(graph_np, tm, tk):
    """Host-side block-CSR: per row-block, the list of nonzero K-block indices."""
    nb_m = graph_np.shape[0] // tm
    nb_k = graph_np.shape[1] // tk
    blocks = graph_np.reshape(nb_m, tm, nb_k, tk)
    nz = np.abs(blocks).max(axis=(1, 3)) > 0.0          # (nb_m, nb_k)
    nnzb = nz.sum(axis=1).astype(np.int32)              # (nb_m,)
    n_slots = max(int(nnzb.max()), 1)
    kblk = np.zeros((nb_m, n_slots), dtype=np.int32)
    for i in range(nb_m):
        idx = np.nonzero(nz[i])[0].astype(np.int32)
        if idx.size == 0:
            idx = np.zeros((1,), dtype=np.int32)         # dummy, masked in kernel
        kblk[i, : idx.size] = idx
        kblk[i, idx.size:] = idx[-1]                     # repeat last -> no re-DMA
    return kblk, nnzb, n_slots


def gcn_layer_forward(graph, features, *, tm=None, tk=None, tf=None, use_bf16=True):
    """out = graph @ features   (== torch.sparse.mm(graph, features)).

    graph:    [N, N] dense representation of the sparse adjacency (row-major).
    features: [N, F] node feature matrix.
    Returns:  [N, F] float32.

    Note: the block-sparse structure is computed on host from concrete values,
    so this wrapper is not meant to be traced under jit with an abstract graph.
    """
    N, K = graph.shape
    K2, F = features.shape
    assert K == K2, "graph cols must match features rows"

    # ---- tile sizes: MXU/VMEM-sized, (8,128)-aligned, never full N x N ----
    tm = tm if tm is not None else min(256, _round_up(N, 8))
    tk = tk if tk is not None else min(512, _round_up(K, 128))
    tf = tf if tf is not None else min(512, _round_up(F, 128))
    assert tm % 8 == 0 and tk % 128 == 0 and tf % 128 == 0, (
        "tm must be a multiple of 8; tk and tf must be multiples of 128"
    )

    m_pad = _round_up(N, tm)
    k_pad = _round_up(K, tk)
    f_pad = _round_up(F, tf)

    compute_dtype = jnp.bfloat16 if use_bf16 else jnp.float32

    graph_p = jnp.pad(graph, ((0, m_pad - N), (0, k_pad - K))).astype(compute_dtype)
    feat_p = jnp.pad(features, ((0, k_pad - K), (0, f_pad - F))).astype(compute_dtype)

    # ---- host-side block-CSR structure of the (padded) adjacency ----
    graph_np = np.asarray(jax.device_get(graph), dtype=np.float32)
    graph_np = np.pad(graph_np, ((0, m_pad - N), (0, k_pad - K)))
    kblk_np, nnzb_np, n_slots = _block_structure(graph_np, tm, tk)
    kblk = jnp.asarray(kblk_np)
    nnzb = jnp.asarray(nnzb_np)

    nb_m = m_pad // tm
    nb_f = f_pad // tf
    grid = (nb_m, nb_f, n_slots)

    # ---- cost estimate: only nonzero blocks are touched ----
    itemsize = jnp.dtype(compute_dtype).itemsize
    nnz_blocks = max(int(nnzb_np.sum()), 1)
    cost = pl.CostEstimate(
        flops=2 * tm * tk * tf * nb_f * nnz_blocks,
        transcendentals=0,
        bytes_accessed=(nnz_blocks * nb_f * (tm * tk + tk * tf) * itemsize
                        + m_pad * f_pad * 4),
    )

    # ---- VMEM budget: double-buffered bf16 inputs + resident f32 out tile ----
    vmem_est = 2 * tm * tk * itemsize + 2 * tk * tf * itemsize + 2 * tm * tf * 4
    vmem_limit = min(max(int(1.5 * vmem_est) + (2 << 20), 16 << 20), 48 << 20)

    out_p = pl.pallas_call(
        _bsr_spmm_kernel,
        out_shape=jax.ShapeDtypeStruct((m_pad, f_pad), jnp.float32),
        grid_spec=pltpu.PrefetchScalarGridSpec(
            num_scalar_prefetch=2,  # kblk, nnzb -> SMEM, visible to index_maps
            grid=grid,
            in_specs=[
                # graph tile: the s-th nonzero K-block of row-block i
                pl.BlockSpec((tm, tk), lambda i, j, s, kb, nz: (i, kb[i, s])),
                # matching features tile
                pl.BlockSpec((tk, tf), lambda i, j, s, kb, nz: (kb[i, s], j)),
            ],
            out_specs=pl.BlockSpec((tm, tf), lambda i, j, s, kb, nz: (i, j)),
        ),
        compiler_params=pltpu.CompilerParams(
            dimension_semantics=("parallel", "parallel", "arbitrary"),
            vmem_limit_bytes=vmem_limit,
        ),
        cost_estimate=cost,
    )(kblk, nnzb, graph_p, feat_p)

    return out_p[:N, :F]


def init_gcn_layer_params(key, inF, outF):
    """Deterministic init of the (unused-in-forward) W1 / W2 Linear parameters,
    matching the shapes in GCN_Layer.__init__."""
    k1, k2, k3, k4 = jax.random.split(key, 4)
    bound = 1.0 / jnp.sqrt(inF)
    return {
        "W1": {
            "weight": jax.random.uniform(k1, (outF, inF), jnp.float32, -bound, bound),
            "bias": jax.random.uniform(k2, (outF,), jnp.float32, -bound, bound),
        },
        "W2": {
            "weight": jax.random.uniform(k3, (outF, inF), jnp.float32, -bound, bound),
            "bias": jax.random.uniform(k4, (outF,), jnp.float32, -bound, bound),
        },
    }


if __name__ == "__main__":
    key = jax.random.PRNGKey(0)
    k_graph, k_feat, k_params = jax.random.split(key, 3)

    # Small, forward-consistent shapes: N nodes, inF features.
    N, inF, outF = 512, 64, 32
    TM = TK = TF = 128  # demo tile sizes, (8,128)-aligned

    # Banded block-sparse adjacency: edges only between nodes whose 128-node
    # blocks are adjacent -> several 128x128 blocks are entirely zero, which
    # the block-CSR prefetch path skips (nnz blocks per row-block: 2/3/3/2).
    dense_rand = jax.random.uniform(k_graph, (N, N), jnp.float32)
    blk_id = jnp.arange(N) // TK
    band = jnp.abs(blk_id[:, None] - blk_id[None, :]) <= 1
    mask = (dense_rand > 0.8) & band                     # ~20% nonzeros in-band
    graph = jnp.where(mask, dense_rand, 0.0)

    # Self-loops + symmetric normalization (typical GCN preprocessing);
    # the forward itself is just graph @ features.
    graph = graph + jnp.eye(N, dtype=jnp.float32)
    deg = jnp.sum(graph, axis=1)
    d_inv_sqrt = 1.0 / jnp.sqrt(deg)
    graph = graph * d_inv_sqrt[:, None] * d_inv_sqrt[None, :]

    features = jax.random.normal(k_feat, (N, inF), jnp.float32)

    # W1 / W2 parameters (present in the module, unused in forward).
    _params = init_gcn_layer_params(k_params, inF, outF)

    out = gcn_layer_forward(graph, features, tm=TM, tk=TK, tf=TF)
    out = jax.block_until_ready(out)
    assert out.shape == (N, inF)

    # Reference checks: exact-numerics (bf16 operands, f32 accum) and full f32.
    ref_bf16 = jnp.dot(
        graph.astype(jnp.bfloat16), features.astype(jnp.bfloat16),
        preferred_element_type=jnp.float32,
    )
    ref_f32 = graph @ features
    assert jnp.allclose(out, ref_bf16, atol=2e-3, rtol=2e-3), "mismatch vs bf16 reference"
    assert jnp.allclose(out, ref_f32, atol=3e-2, rtol=3e-2), "mismatch vs f32 reference"

    print("KERNEL_OK")
</pallas_src>

<mosaic_0001>
module attributes {stable_mosaic.version = 11 : i64} {
  func.func @_bsr_spmm_kernel(%arg0: i32, %arg1: i32, %arg2: i32, %arg3: memref<4x3xi32, #tpu.memory_space<smem>>, %arg4: memref<4xi32, #tpu.memory_space<smem>>, %arg5: memref<128x128xbf16, #tpu.memory_space<vmem>>, %arg6: memref<128x128xbf16, #tpu.memory_space<vmem>>, %arg7: memref<128x128xf32, #tpu.memory_space<vmem>>) attributes {dimension_semantics = [#tpu.dimension_semantics<parallel>, #tpu.dimension_semantics<parallel>, #tpu.dimension_semantics<arbitrary>], iteration_bounds = array<i64: 4, 1, 3>, scalar_prefetch = 2 : i64, scratch_operands = 0 : i64, tpu.core_type = #tpu.core_type<tc>, window_params = [{transform_indices = @transform_0, window_bounds = array<i64: 128, 128>}, {transform_indices = @transform_1, window_bounds = array<i64: 128, 128>}, {transform_indices = @transform_2, window_bounds = array<i64: 128, 128>}]} {
    %c0_i32 = arith.constant 0 : i32
    %0 = arith.cmpi eq, %arg2, %c0_i32 : i32
    %1 = arith.extui %0 : i1 to i32
    %c0_i32_0 = arith.constant 0 : i32
    %2 = arith.cmpi ne, %1, %c0_i32_0 : i32
    scf.if %2 {
      %cst = arith.constant 0.000000e+00 : f32
      %8 = vector.broadcast %cst : f32 to vector<128x128xf32>
      %c0 = arith.constant 0 : index
      %c0_2 = arith.constant 0 : index
      %9 = vector.load %arg7[%c0, %c0_2] : memref<128x128xf32, #tpu.memory_space<vmem>>, vector<128x128xf32>
      tpu.vector_store %arg7[%c0, %c0_2], %8 {strides = array<i32>} : memref<128x128xf32, #tpu.memory_space<vmem>>, vector<128x128xf32>,
    } else {
    }
    %3 = arith.index_cast %arg0 : i32 to index
    %4 = memref.load %arg4[%3] : memref<4xi32, #tpu.memory_space<smem>>
    %5 = arith.cmpi slt, %arg2, %4 : i32
    %6 = arith.extui %5 : i1 to i32
    %c0_i32_1 = arith.constant 0 : i32
    %7 = arith.cmpi ne, %6, %c0_i32_1 : i32
    scf.if %7 {
      %c0 = arith.constant 0 : index
      %c0_2 = arith.constant 0 : index
      %8 = vector.load %arg7[%c0, %c0_2] : memref<128x128xf32, #tpu.memory_space<vmem>>, vector<128x128xf32>
      %c0_3 = arith.constant 0 : index
      %c0_4 = arith.constant 0 : index
      %9 = vector.load %arg5[%c0_3, %c0_4] : memref<128x128xbf16, #tpu.memory_space<vmem>>, vector<128x128xbf16>
      %c0_5 = arith.constant 0 : index
      %c0_6 = arith.constant 0 : index
      %10 = vector.load %arg6[%c0_5, %c0_6] : memref<128x128xbf16, #tpu.memory_space<vmem>>, vector<128x128xbf16>
      %cst = arith.constant dense<0.000000e+00> : vector<128x128xf32>
      %11 = tpu.matmul %9, %10, %cst {dimension_numbers = #tpu.dot_dimension_numbers<[1], [0], [0], [1], [0, 0, 1, 1], [], []>} : vector<128x128xbf16>, vector<128x128xbf16>, vector<128x128xf32> -> vector<128x128xf32>
      %12 = arith.addf %8, %11 : vector<128x128xf32>
      %c0_7 = arith.constant 0 : index
      %c0_8 = arith.constant 0 : index
      %13 = vector.load %arg7[%c0_7, %c0_8] : memref<128x128xf32, #tpu.memory_space<vmem>>, vector<128x128xf32>
      tpu.vector_store %arg7[%c0_7, %c0_8], %12 {strides = array<i32>} : memref<128x128xf32, #tpu.memory_space<vmem>>, vector<128x128xf32>,
    } else {
    }
    return
  }
  func.func @transform_0(%arg0: i32, %arg1: i32, %arg2: i32, %arg3: memref<4x3xi32, #tpu.memory_space<smem>>, %arg4: memref<4xi32, #tpu.memory_space<smem>>) -> (i32, i32) {
    %0 = arith.index_cast %arg0 : i32 to index
    %1 = arith.index_cast %arg2 : i32 to index
    %2 = memref.load %arg3[%0, %1] : memref<4x3xi32, #tpu.memory_space<smem>>
    %c0_i32 = arith.constant 0 : i32
    return %arg0, %2 : i32, i32
  }
  func.func @transform_1(%arg0: i32, %arg1: i32, %arg2: i32, %arg3: memref<4x3xi32, #tpu.memory_space<smem>>, %arg4: memref<4xi32, #tpu.memory_space<smem>>) -> (i32, i32) {
    %0 = arith.index_cast %arg0 : i32 to index
    %1 = arith.index_cast %arg2 : i32 to index
    %2 = memref.load %arg3[%0, %1] : memref<4x3xi32, #tpu.memory_space<smem>>
    %c0_i32 = arith.constant 0 : i32
    return %2, %arg1 : i32, i32
  }
  func.func @transform_2(%arg0: i32, %arg1: i32, %arg2: i32, %arg3: memref<4x3xi32, #tpu.memory_space<smem>>, %arg4: memref<4xi32, #tpu.memory_space<smem>>) -> (i32, i32) {
    %c0_i32 = arith.constant 0 : i32
    return %arg0, %arg1 : i32, i32
  }
}

</mosaic_0001>

<bundles_post_ra>
// kernel: tpu_custom_call.1
= control target key start
LH: loop header
LB: loop body
LE: loop exit
PB: predicated region body
PF: predicated region fallthrough
CT: control target
= control target key end

     0   :  { %s1743_s0 = inlined_call_operand.hbm [shape: s32[4,3], index: 0, kind: input, shape index: {}]   ;;  %s1744_s2 = inlined_call_operand.hbm [shape: bf16[512,512], index: 2, kind: input, shape index: {}]   ;;  %s1745_s3 = inlined_call_operand.hbm [shape: bf16[512,128], index: 3, kind: input, shape index: {}]   ;;  %s1746_s4 = inlined_call_operand.hbm [shape: f32[512,128], index: 4, kind: output, shape index: {}]   ;;  %s1747_s1 = inlined_call_operand.vmem [shape: s32[4], index: 1, kind: input, shape index: {}]  }
   0x1   :  { %1761 = sst [smem:[#allocation25_spill]] %s1744_s2  ;;  %s1011_s17 = scalar_lea.hbm %s1743_s0, 64 }
   0x2   :  { %1762 = sst [smem:[#allocation26_spill]] %s1745_s3  ;;  %p1012_p0 = scmp.ne.s32.totalorder %s1743_s0, %s1011_s17 }
   0x3   :  { %1763 = sst [smem:[#allocation27_spill]] %s1746_s4  ;;  %p1015_p1 = scmp.lt.u32.totalorder %s1011_s17, %s1743_s0 }
   0x5   :  { %p1017_p2 = pnand %p1015_p1, %p1012_p0 }
   0x7   :  { %1020 = shalt.err (!%p1017_p2)  }
   0x8   :  { %s1247_s22 = smov [#allocation3]   ;;  %s11_s27 = sshll.u32 %s1747_s1, 4  ;;  %s12_s27 = int_to_ptr.vmem [resolvable:$true] %s11_s27 }
   0x9   :  { %10 = dma.hbm_to_smem %s1743_s0, 64, %s1247_s22, [#allocation2] }
   0xa   :  { %s1021_s28 = scalar_lea.vmem %s12_s27, 16  ;;  %p1026_p4 = scmp.lt.s32.totalorder %s12_s27, %s12_s27 }
   0xb   :  { %p1022_p3 = scmp.ne.s32.totalorder %s12_s27, %s1021_s28  ;;  %p1027_p5 = scmp.lt.s32.totalorder %s1021_s28, %s1021_s28 }
   0xd   :  { %p1028_p6 = por %p1027_p5, %p1026_p4 }
   0xf   :  { %p1029_p7 = pnand %p1028_p6, %p1022_p3 }
  0x11   :  { %1032 = shalt.err (!%p1029_p7)  }
  0x12   :  { %s1248_s29 = smov [#allocation4]  }
  0x13   :  { %14 = dma.vmem_to_smem %s12_s27, 16, %s1248_s29, [#allocation2] }
  0x14   :  { %1177 = dma.done.wait [#allocation2], 80 }
  0x15   :  { %1178 = vsyncadd [#allocation2], 4294967216 }
  0x16   :  { %16 = sfence }
  0x17   :  { %17 = vsyncpa [#allocation6], 0 }
  0x18   :  { %19 = vsyncpa [#allocation6 + $0x1], 0 }
  0x19   :  { %20 = vsyncpa [#allocation9], 0 }
  0x1a   :  { %22 = vsyncpa [#allocation9 + $0x1], 0 }
  0x1b   :  { %23 = vsyncpa [#allocation7], 0 }
  0x1c   :  { %25 = vsyncpa [#allocation7 + $0x1], 0  ;;  %s1298_s0 = smov 0   ;;  %s1300_s1 = smov 0  }
  0x1d   :  { %s1302_s30 = smov 0   ;;  %s1304_s5 = smov 0  }
  0x1e   :  { %s1306_s6 = smov 0   ;;  %s1308_s7 = smov 0  }
  0x1f   :  { %s1310_s8 = smov 0   ;;  %s1312_s9 = smov 0  }
  0x20   :  { %s1314_s10 = smov 0   ;;  %s1316_s11 = smov 0  }
  0x21   :  { %s1318_s12 = smov 0   ;;  %s1320_s13 = smov 0  }
  0x22   :  { %s1322_s14 = smov 0   ;;  %s1324_s15 = smov 0  }
  0x23 LB: > { %1764 = sst [smem:[#allocation19_spill]] %s1229_s11  ;;  %s43_s16 = sadd.s32 1, %s1237_s13  ;;  %s1245_s15 = sphi %s1324_s15, %s31_s15   ;;  %s1241_s14 = sphi %s1322_s14, %s1801_s14   ;;  %s1237_s13 = sphi %s1320_s13, %s1800_s13   ;;  %s1233_s12 = sphi %s1318_s12, %s1799_s12   ;;  %s1229_s11 = sphi %s1316_s11, %s1811_s11   ;;  %s1225_s10 = sphi %s1314_s10, %s1810_s10   ;;  %s1221_s9 = sphi %s1312_s9, %s1809_s9   ;;  %s1217_s8 = sphi %s1310_s8, %s1808_s8   ;;  %s1213_s7 = sphi %s1308_s7, %s1807_s7   ;;  %s1209_s6 = sphi %s1306_s6, %s1806_s6   ;;  %s1205_s5 = sphi %s1304_s5, %s1805_s5   ;;  %s1201_s30 = sphi %s1302_s30, %s1804_s30   ;;  %s1197_s1 = sphi %s1300_s1, %s1803_s1   ;;  %s1193_s0 = sphi %s1298_s0, %s1802_s0  }
  0x24   : > { %1765 = sst [smem:[#allocation20_spill]] %s1233_s12  ;;  %s50_s17 = sadd.s32 1, %s1241_s14 }
  0x25   : > { %1766 = sst [smem:[#allocation21_spill]] %s1237_s13  ;;  %p44_p8 = scmp.ge.s32.totalorder %s43_s16, 3 }
  0x26   : > { %1767 = sst [smem:[#allocation22_spill]] %s1241_s14  ;;  %s54_s18 = sshra.s32 %s1237_s13, 7 }
  0x27   : > { %s56_s19 = sadd.s32 %s1241_s14, %s54_s18  ;;  %s59_s20 = sand.u32 127, %s1237_s13 }
  0x28   : > { %s1813_s16 = smov (%p44_p8, %s43_s16), 0  ;;  %s1815_s17 = smov (!%p44_p8, %s50_s17), %s1241_s14 }
  0x29   : > { %1768 = sst [smem:[#allocation23_spill]] %s1813_s16  ;;  %s739_s21 = sshll.u32 %s56_s19, 7 }
  0x2a   : > { %s62_s22 = sshra.s32 %s1813_s16, 7  ;;  %p52_p9 = scmp.ge.s32.totalorder %s1815_s17, 4 }
  0x2b   : > { %s1377_s23 = sadd.s32 %s739_s21, %s59_s20  ;;  %s67_s25 = sand.u32 127, %s1813_s16 }
  0x2c   : > { %s61_s24 = sld [smem:[#allocation3 + %s1377_s23]]  ;;  %s1817_s17 = smov (%p52_p9, %s1815_s17), 0 }
  0x2d   : > { %1769 = sst [smem:[#allocation24_spill]] %s1817_s17  ;;  %s75_s26 = sadd.s32 1, %s1225_s10 }
  0x2e   : > { %p82_p10 = scmp.ne.s32.totalorder %s1225_s10, %s1221_s9  ;;  %s64_s27 = sadd.s32 %s62_s22, %s1817_s17 }
  0x2f   : > { %s70_s28 = ssub.s32 %s1241_s14, %s1817_s17  ;;  %s740_s29 = sshll.u32 %s64_s27, 7 }
  0x30   : > { %p1754_p11 = scmp.eq.s32.totalorder %s1245_s15, 0  ;;  %s1390_s18 = sadd.s32 %s740_s29, %s67_s25 }
  0x31   : > { %s69_s19 = sld [smem:[#allocation3 + %s1390_s18]]  ;;  %p145_p0 = scmp.eq.s32.totalorder %s70_s28, 0 }
  0x32   : > { %p1397_p13 = por %p1754_p11, %p82_p10  ;;  %s147_s21 = sadd.s32 1, %s1201_s30 }
  0x33   : > { %p1753_p1 = scmp.lt.s32.totalorder %s1245_s15, 12  ;;  %s184_s25 = sand.u32 1, %s1225_s10  }
  0x34   : > { %s1404_s22 = scalar_select %p145_p0, %s1201_s30, %s147_s21  }
  0x35   : > { %s781_s27 = sshll.u32 %s1241_s14, 6  ;;  %s745_s29 = sshll.u32 %s184_s25, 6 }
  0x36   : > { %s188_s13 = scalar_lea.vmem [#allocation5], %s745_s29  ;;  %p1426_p3 = pnand %p1753_p1, %p1397_p13 }
  0x37   : > { %s71_s17 = ssub.s32 %s61_s24, %s69_s19  ;;  %s205_s4 = sshll.u32 %s188_s13, 4  ;;  %s1408_s4 = int_to_ptr.vmem [resolvable:$true] %s205_s4 }
  0x38   : > { %s72_s16 = sor.u32 %s71_s17, %s70_s28  ;;  %p754_p4 = scmp.ge.s32.totalorder %s1245_s15, 1 }
  0x39   : > { %p73_p2 = scmp.eq.s32.totalorder %s72_s16, 0  ;;  %p243_p5 = scmp.lt.s32.totalorder %s1245_s15, 13 }
  0x3a   : > { %s848_s12 = scalar_select %p1397_p13, [#allocation3], [#allocation11] }
  0x3b   : > { %s1413_s11 = scalar_select %p73_p2, %s1225_s10, %s75_s26  }
  0x3c   : > { %s849_s3 = scalar_select %p1397_p13, %s1377_s23, 0 }
  0x3d   : > { %s1819_s12 = smov (!%p1753_p1, %s848_s12), [#allocation13]  ;;  %p1432_p6 = pnand %p754_p4, %p243_p5 }
  0x3e   : > { %s1821_s3 = smov (!%p1753_p1, %s849_s3), 0  ;;  %s1773_s2 = sld [smem:[#allocation25_spill]] }
  0x3f   : > { %s196_s13 = sld [smem:[%s1819_s12 + %s1821_s3]]  ;;  %s1441_s21 = scalar_lea.sflag [#allocation6], %s184_s25 }
  0x40   : > { %p1035_p8 = pneg %p1426_p3 }
  0x44   : > { %s1038_s29 = scalar_lea.hbm %s1773_s2, 16384 }
  0x45   : > { %s202_s17 = sadd.s32 %s781_s27, %s196_s13 }
  0x46   : > { %s749_s26 = sshll.u32 %s202_s17, 6 }
  0x47   : > { %s1439_s20 = scalar_lea.hbm %s1773_s2, %s749_s26 }
  0x48   : > { %s1033_s3 = scalar_lea.hbm %s1439_s20, 1024  ;;  %p1039_p13 = scmp.lt.u32.totalorder %s1439_s20, %s1773_s2 }
  0x49   : > { %p1034_p7 = scmp.ne.s32.totalorder %s1439_s20, %s1033_s3  ;;  %p1040_p0 = scmp.lt.u32.totalorder %s1038_s29, %s1033_s3 }
  0x4a   : > { %p1042_p4 = scmp.lt.u32.totalorder %s1033_s3, %s1439_s20 }
  0x4b   : > { %p1036_p9 = pnand %p1035_p8, %p1034_p7  ;;  %p1041_p2 = por %p1040_p0, %p1039_p13 }
  0x4d   : > { %p1037_p10 = pneg %p1036_p9  ;;  %p1043_p5 = por %p1042_p4, %p1041_p2 }
  0x4f   : > { %p1044_p1 = pnand %p1043_p5, %p1037_p10 }
  0x51   : > { %1047 = shalt.err (!%p1044_p1)
}
  0x52   : > { %s1048_s25 = scalar_lea.vmem %s1408_s4, 1024  ;;  %s1249_s26 = smov [#allocation5]  }
  0x53   : > { %p1049_p7 = scmp.ne.s32.totalorder %s1408_s4, %s1048_s25  ;;  %s1053_s28 = sshll.u32 %s1249_s26, 4  ;;  %s1054_s28 = int_to_ptr.vmem [resolvable:$false] %s1053_s28 }
  0x54   : > { %s1055_s19 = scalar_lea.vmem %s1054_s28, 2048  ;;  %p1056_p12 = scmp.lt.s32.totalorder %s1408_s4, %s1054_s28 }
  0x55   : > { %p1051_p9 = pnand %p1049_p7, %p1035_p8  ;;  %p1057_p13 = scmp.lt.s32.totalorder %s1055_s19, %s1048_s25 }
  0x57   : > { %p1052_p11 = pneg %p1051_p9  ;;  %p1058_p0 = por %p1057_p13, %p1056_p12 }
  0x59   : > { %p1059_p2 = pnand %p1058_p0, %p1052_p11 }
  0x5b   : > { %1062 = shalt.err (!%p1059_p2)
}
  0x5c   : > { %s1250_s3 = smov 256   ;;  %s1755_s12 = smov 64  }
  0x5d   : > { %s1756_s27 = smov 4   ;;  %s737_s29 = sadd.s32 4294967295, %s1245_s15  }
  0x5e   : > { %863 = dma.hbm_to_vmem [thread:$0]  (!%p1426_p3), %s1439_s20, 1024, %s1408_s4, %s1441_s21, %s1250_s3, %s1755_s12, %s1756_s27  }
  0x5f   : > { %s738_s13 = sadd.s32 4294967294, %s1245_s15   ;;  %p89_p11 = scmp.eq.s32.totalorder %s737_s29, 0 }
  0x60   : > { %s105_s17 = sld [smem:[#allocation3 + %s1377_s23]]  ;;  %s119_s26 = sadd.s32 1, %s1213_s7 }
  0x61   : > { %s113_s25 = sld [smem:[#allocation3 + %s1390_s18]]  ;;  %p1774_p12 = scmp.ne.s32.totalorder %s1221_s9, %s1217_s8 }
  0x62   : > { %p126_p8 = scmp.ne.s32.totalorder %s1213_s7, %s1209_s6  ;;  %p132_p10 = scmp.ne.s32.totalorder %s1209_s6, %s1205_s5 }
  0x63   : > { %p1479_p1 = por %p89_p11, %p1774_p12  ;;  %p157_p4 = scmp.ne.s32.totalorder %s1201_s30, %s1197_s1 }
  0x64   : > { %p1776_p5 = scmp.eq.s32.totalorder %s1245_s15, 0  ;;  %p158_p7 = scmp.eq.s32.totalorder %s737_s29, 11 }
  0x65   : > { %s1775_s28 = scalar_select %p1479_p1, 1, 0 }
  0x66   : > { %p1491_p3 = por %p126_p8, %p1776_p5  ;;  %p1495_p9 = por %p132_p10, %p89_p11 }
  0x67   : > { %p163_p13 = scmp.ne.s32.totalorder %s1197_s1, %s1193_s0  ;;  %p1501_p0 = por %p158_p7, %p157_p4 }
  0x68   : > { %s1778_s8 = scalar_select %p1495_p9, 1, 0 }
  0x69   : > { %s1779_s5 = scalar_select %p1501_p0, 1, 0 }
  0x6a   : > { %p164_p2 = scmp.eq.s32.totalorder %s738_s13, 11  ;;  %s114_s18 = ssub.s32 %s105_s17, %s113_s25 }
  0x6b   : > { %s215_s24 = sand.u32 1, %s1213_s7   ;;  %p117_p12 = scmp.eq.s32.totalorder %s114_s18, 0 }
  0x6c   : > { %p1506_p8 = por %p164_p2, %p163_p13  ;;  %s750_s19 = sshll.u32 %s215_s24, 6 }
  0x6d   : > { %s1511_s21 = scalar_select %p117_p12, %s1213_s7, %s119_s26  }
  0x6e   : > { %s1780_s20 = scalar_select %p1506_p8, 1, 0 }
  0x6f   : > { %p1781_p11 = scmp.lt.s32.totalorder %s1245_s15, 12  ;;  %s1823_s23 = smov (!%p1491_p3, %s1377_s23), 0 }
  0x70   : > { %s851_s29 = scalar_select %p1491_p3, [#allocation3], [#allocation12] }
  0x71   : > { %p1517_p10 = pnand %p1781_p11, %p1491_p3  ;;  %p1783_p4 = pmov %p1781_p11 }
  0x72   : > { %s219_s17 = scalar_lea.vmem [#allocation8], %s750_s19  ;;  %s1785_s27 = sld [smem:[#allocation26_spill]] }
  0x73   : > { %s1825_s29 = smov (!%p1783_p4, %s851_s29), [#allocation14]  ;;  %p1784_p5 = pmov %p1783_p4 }
  0x74   : > { %s235_s25 = sshll.u32 %s219_s17, 4  ;;  %s1537_s4 = scalar_lea.sflag [#allocation9], %s215_s24  ;;  %s1530_s25 = int_to_ptr.vmem [resolvable:$true] %s235_s25 }
  0x75   : > { %s1827_s23 = smov (!%p1784_p5, %s1823_s23), 0  ;;  %p1065_p7 = pneg %p1517_p10 }
  0x76   : > { %s227_s13 = sld [smem:[%s1825_s29 + %s1827_s23]] }
  0x78   : > { %s1068_s12 = scalar_lea.hbm %s1785_s27, 4096 }
  0x7c   : > { %s782_s26 = sshll.u32 %s227_s13, 10 }
  0x7d   : > { %s1535_s2 = scalar_lea.hbm %s1785_s27, %s782_s26 }
  0x7e   : > { %s1063_s14 = scalar_lea.hbm %s1535_s2, 1024  ;;  %p1069_p12 = scmp.lt.u32.totalorder %s1535_s2, %s1785_s27 }
  0x7f   : > { %p1064_p3 = scmp.ne.s32.totalorder %s1535_s2, %s1063_s14  ;;  %p1070_p11 = scmp.lt.u32.totalorder %s1068_s12, %s1063_s14 }
  0x80   : > { %p1072_p5 = scmp.lt.u32.totalorder %s1063_s14, %s1535_s2 }
  0x81   : > { %p1066_p13 = pnand %p1065_p7, %p1064_p3  ;;  %p1071_p4 = por %p1070_p11, %p1069_p12 }
  0x83   : > { %p1067_p2 = pneg %p1066_p13  ;;  %p1073_p8 = por %p1072_p5, %p1071_p4 }
  0x85   : > { %p1074_p0 = pnand %p1073_p8, %p1067_p2 }
  0x87   : > { %1077 = shalt.err (!%p1074_p0)
}
  0x88   : > { %s1078_s24 = scalar_lea.vmem %s1530_s25, 1024  ;;  %s1253_s17 = smov [#allocation8]  }
  0x89   : > { %p1079_p3 = scmp.ne.s32.totalorder %s1530_s25, %s1078_s24  ;;  %s1083_s26 = sshll.u32 %s1253_s17, 4  ;;  %s1084_s26 = int_to_ptr.vmem [resolvable:$false] %s1083_s26 }
  0x8a   : > { %s1085_s18 = scalar_lea.vmem %s1084_s26, 2048  ;;  %p1086_p1 = scmp.lt.s32.totalorder %s1530_s25, %s1084_s26 }
  0x8b   : > { %p1081_p13 = pnand %p1079_p3, %p1065_p7  ;;  %p1087_p12 = scmp.lt.s32.totalorder %s1085_s18, %s1078_s24 }
  0x8d   : > { %p1082_p9 = pneg %p1081_p13  ;;  %p1088_p11 = por %p1087_p12, %p1086_p1 }
  0x8f   : > { %p1089_p4 = pnand %p1088_p11, %p1082_p9 }
  0x91   : > { %1092 = shalt.err (!%p1089_p4)
}
  0x92   : > { %s1786_s14 = smov 4   ;;  %s1787_s23 = smov 64  }
  0x93   : > { %868 = dma.hbm_to_vmem [thread:$0]  (!%p1517_p10), %s1535_s2, 1024, %s1530_s25, %s1537_s4, %s1787_s23, %s1787_s23, %s1786_s14  }
  0x94   : > { %247 = sbr.rel (%p1432_p6) target bundleno = 476 (0x1dc), region = 28  ;;  %s249_s19 = sand.u32 (!%p1432_p6), 1, %s1221_s9  }
  0x95   : > { %s755_s12 = sshll.u32 (!%p1432_p6), %s249_s19, 6  ;;  %s250_s29 = scalar_lea.sflag (!%p1432_p6), [#allocation6], %s249_s19 }
  0x96   : > { %s1571_s13 = scalar_lea.vmem (!%p1432_p6), [#allocation5], %s755_s12  ;;  %p1788_p1 = scmp.ne.s32.totalorder (!%p1432_p6), %s1775_s28, 0 }
  0x9b   : > { %1180 = dma.done.wait (%p1788_p1), %s250_s29, 1024  }
  0x9c   : > { %1182 = vsyncadd (%p1788_p1), %s250_s29, 4294966272  ;;  %s258_s3 = sand.u32 1, %s1209_s6   ;;  %p1789_p6 = scmp.ne.s32.totalorder %s1778_s8, 0 }
  0x9d   : > { %s756_s24 = sshll.u32 %s258_s3, 6  ;;  %s259_s2 = scalar_lea.sflag [#allocation9], %s258_s3 }
  0x9e   : > { %s1578_s25 = scalar_lea.vmem [#allocation8], %s756_s24 }
  0x9f   : > { %1184 = dma.done.wait (%p1789_p6), %s259_s2, 1024  }
  0xa0   : > { %1186 = vsyncadd (%p1789_p6), %s259_s2, 4294966272  ;;  %s285_s16 = sand.u32 1, %s1197_s1   ;;  %s1790_s28 = sld [smem:[#allocation19_spill]] }
  0xa1   : > { %s757_s4 = sshll.u32 %s285_s16, 7 }
  0xa2   : > { %s1587_s17 = scalar_lea.vmem [#allocation10], %s757_s4 }
  0xa6   : > { %p758_p9 = scmp.ne.s32.totalorder %s1790_s28, 0 }
  0xa7   : > { %v1254_v0 = vmov (!%p758_p9), 0.0  }
  0xa8   : > { %311 = sbr.rel (%p758_p9) target bundleno = 176 (0xb0), region = 40  ;;  %312 = vst [vmem:[%s1587_s17] sm:$0xff] (!%p758_p9), %v1254_v0  ;;  %313 = vst [vmem:[%s1587_s17 + $0x8] sm:$0xff] (!%p758_p9), %v1254_v0 }
  0xa9   : > { %314 = vst [vmem:[%s1587_s17 + $0x10] sm:$0xff] (!%p758_p9), %v1254_v0  ;;  %315 = vst [vmem:[%s1587_s17 + $0x18] sm:$0xff] (!%p758_p9), %v1254_v0 }
  0xaa   : > { %316 = vst [vmem:[%s1587_s17 + $0x20] sm:$0xff] (!%p758_p9), %v1254_v0  ;;  %317 = vst [vmem:[%s1587_s17 + $0x28] sm:$0xff] (!%p758_p9), %v1254_v0 }
  0xab   : > { %318 = vst [vmem:[%s1587_s17 + $0x30] sm:$0xff] (!%p758_p9), %v1254_v0  ;;  %319 = vst [vmem:[%s1587_s17 + $0x38] sm:$0xff] (!%p758_p9), %v1254_v0 }
  0xac   : > { %320 = vst [vmem:[%s1587_s17 + $0x40] sm:$0xff] (!%p758_p9), %v1254_v0  ;;  %321 = vst [vmem:[%s1587_s17 + $0x48] sm:$0xff] (!%p758_p9), %v1254_v0 }
  0xad   : > { %322 = vst [vmem:[%s1587_s17 + $0x50] sm:$0xff] (!%p758_p9), %v1254_v0  ;;  %323 = vst [vmem:[%s1587_s17 + $0x58] sm:$0xff] (!%p758_p9), %v1254_v0 }
  0xae   : > { %324 = vst [vmem:[%s1587_s17 + $0x60] sm:$0xff] (!%p758_p9), %v1254_v0  ;;  %325 = vst [vmem:[%s1587_s17 + $0x68] sm:$0xff] (!%p758_p9), %v1254_v0 }
  0xaf   : > { %326 = vst [vmem:[%s1587_s17 + $0x70] sm:$0xff] %v1254_v0  ;;  %327 = vst [vmem:[%s1587_s17 + $0x78] sm:$0xff] %v1254_v0 }
  0xb0 PF: > { %s1791_s8 = sld [smem:[#allocation20_spill]]  ;;  %s1792_s18 = sld [smem:[#allocation19_spill]] }
  0xb6   : > { %s328_s26 = sld [smem:[#allocation4 + %s1791_s8]] }
  0xbc   : > { %p759_p0 = scmp.ge.s32.totalorder %s1792_s18, %s328_s26 }
  0xbd   : > { %v995_v1 = vld [vmem:[%s1578_s25] sm:$0xff] (!%p759_p0)   ;;  %v996_v2 = vld [vmem:[%s1578_s25 + $0x8] sm:$0xff] (!%p759_p0)   ;;  %v997_v3 = vld [vmem:[%s1578_s25 + $0x10] sm:$0xff] (!%p759_p0)  }
  0xbe   : > { %332 = sbr.rel (%p759_p0) target bundleno = 448 (0x1c0), region = 44  ;;  %800 = vmatprep.subr.bf16.mxu0 (!%p759_p0), %v995_v1  ;;  %832 = vmatprep.subr.bf16.mxu1 (!%p759_p0), %v995_v1  ;;  %v998_v4 = vld [vmem:[%s1578_s25 + $0x18] sm:$0xff] (!%p759_p0)   ;;  %v1003_v5 = vld [vmem:[%s1571_s13] sm:$0xff] (!%p759_p0)   ;;  %v1000_v8 = vld [vmem:[%s1578_s25 + $0x28] sm:$0xff] (!%p759_p0)  }
  0xbf   : > { %801 = vmatpush3.bf16.msra.mxu0 (!%p759_p0), %v995_v1  ;;  %840 = vmatpush3.bf16.msra.mxu1 (!%p759_p0), %v995_v1  ;;  %v1004_v6 = vld [vmem:[%s1571_s13 + $0x20] sm:$0xff] (!%p759_p0)   ;;  %v1001_v9 = vld [vmem:[%s1578_s25 + $0x30] sm:$0xff] (!%p759_p0)   ;;  %v1002_v10 = vld [vmem:[%s1578_s25 + $0x38] sm:$0xff] (!%p759_p0)  }
  0xc0   : > { %802 = vmatprep.subr.bf16.mxu0 (!%p759_p0), %v996_v2  ;;  %833 = vmatprep.subr.bf16.mxu1 (!%p759_p0), %v996_v2  ;;  %v999_v7 = vld [vmem:[%s1578_s25 + $0x20] sm:$0xff] (!%p759_p0)   ;;  %v1005_v11 = vld [vmem:[%s1571_s13 + $0x8] sm:$0xff] (!%p759_p0)   ;;  %v1007_v13 = vld [vmem:[%s1571_s13 + $0x10] sm:$0xff] (!%p759_p0)  }
  0xc1   : > { %816 = vmatprep.mubr.bf16.mxu0 (!%p759_p0), %v1003_v5  ;;  %824 = vmatprep.mubr.bf16.mxu1 (!%p759_p0), %v1004_v6  ;;  %v1006_v12 = vld [vmem:[%s1571_s13 + $0x28] sm:$0xff] (!%p759_p0)   ;;  %v1008_v14 = vld [vmem:[%s1571_s13 + $0x30] sm:$0xff] (!%p759_p0)   ;;  %v1009_v15 = vld [vmem:[%s1571_s13 + $0x18] sm:$0xff] (!%p759_p0)  }
  0xc2   : > { %v1010_v16 = vld [vmem:[%s1571_s13 + $0x38] sm:$0xff] (!%p759_p0)   ;;  %v335_v17 = vld [vmem:[%s1587_s17 + $0x10] sm:$0xff] (!%p759_p0)  ;;  %v333_v19 = vld [vmem:[%s1587_s17] sm:$0xff] (!%p759_p0) }
  0xc3   : > { %803 = vmatpush3.bf16.msra.mxu0 (!%p759_p0), %v996_v2  ;;  %841 = vmatpush3.bf16.msra.mxu1 (!%p759_p0), %v996_v2  ;;  %v343_v18 = vld [vmem:[%s1587_s17 + $0x50] sm:$0xff] (!%p759_p0)  ;;  %v341_v20 = vld [vmem:[%s1587_s17 + $0x40] sm:$0xff] (!%p759_p0)  ;;  %v336_v23 = vld [vmem:[%s1587_s17 + $0x18] sm:$0xff] (!%p759_p0) }
  0xc4   : > { %804 = vmatprep.subr.bf16.mxu0 (!%p759_p0), %v997_v3  ;;  %834 = vmatprep.subr.bf16.mxu1 (!%p759_p0), %v997_v3  ;;  %v344_v24 = vld [vmem:[%s1587_s17 + $0x58] sm:$0xff] (!%p759_p0)  ;;  %v334_v29 = vld [vmem:[%s1587_s17 + $0x8] sm:$0xff] (!%p759_p0)  ;;  %v339_v41 = vld [vmem:[%s1587_s17 + $0x30] sm:$0xff] (!%p759_p0) }
  0xc5   : > { %v342_v30 = vld [vmem:[%s1587_s17 + $0x48] sm:$0xff]  ;;  %v347_v42 = vld [vmem:[%s1587_s17 + $0x70] sm:$0xff]  ;;  %v337_v43 = vld [vmem:[%s1587_s17 + $0x20] sm:$0xff] }
  0xc6   : > { %v345_v44 = vld [vmem:[%s1587_s17 + $0x60] sm:$0xff]  ;;  %v340_v47 = vld [vmem:[%s1587_s17 + $0x38] sm:$0xff]  ;;  %v338_v53 = vld [vmem:[%s1587_s17 + $0x28] sm:$0xff] }
  0xc7   : > { %805 = vmatpush3.bf16.msra.mxu0 %v997_v3  ;;  %842 = vmatpush3.bf16.msra.mxu1 %v997_v3  ;;  %v348_v48 = vld [vmem:[%s1587_s17 + $0x78] sm:$0xff]  ;;  %v346_v54 = vld [vmem:[%s1587_s17 + $0x68] sm:$0xff] }
  0xc8   : > { %806 = vmatprep.subr.bf16.mxu0 %v998_v4  ;;  %835 = vmatprep.subr.bf16.mxu1 %v998_v4 }
  0xcb   : > { %807 = vmatpush3.bf16.msra.mxu0 %v998_v4  ;;  %843 = vmatpush3.bf16.msra.mxu1 %v998_v4 }
  0xcc   : > { %808 = vmatprep.subr.bf16.mxu0 %v999_v7  ;;  %836 = vmatprep.subr.bf16.mxu1 %v999_v7 }
  0xcf   : > { %809 = vmatpush3.bf16.msra.mxu0 %v999_v7  ;;  %844 = vmatpush3.bf16.msra.mxu1 %v999_v7 }
  0xd0   : > { %810 = vmatprep.subr.bf16.mxu0 %v1000_v8  ;;  %837 = vmatprep.subr.bf16.mxu1 %v1000_v8 }
  0xd3   : > { %811 = vmatpush3.bf16.msra.mxu0 %v1000_v8  ;;  %845 = vmatpush3.bf16.msra.mxu1 %v1000_v8 }
  0xd4   : > { %812 = vmatprep.subr.bf16.mxu0 %v1001_v9  ;;  %838 = vmatprep.subr.bf16.mxu1 %v1001_v9 }
  0xd7   : > { %813 = vmatpush3.bf16.msra.mxu0 %v1001_v9  ;;  %846 = vmatpush3.bf16.msra.mxu1 %v1001_v9 }
  0xd8   : > { %814 = vmatprep.subr.bf16.mxu0 %v1002_v10  ;;  %839 = vmatprep.subr.bf16.mxu1 %v1002_v10 }
  0xdb   : > { %815 = vmatpush3.bf16.msra.mxu0 %v1002_v10  ;;  %847 = vmatpush3.bf16.msra.mxu1 %v1002_v10 }
  0xde   : > { %817 = vmatmul.mubr.bf16.vlgmr.msra.gmra.mrb[0].mxu0 %v1005_v11  ;;  %825 = vmatmul.mubr.bf16.vlgmr.msra.gmra.mrb[0].mxu1 %v1006_v12 }
  0xdf   : > { %820 = vmatprep.mubr.bf16.mxu0 %v1007_v13  ;;  %828 = vmatprep.mubr.bf16.mxu1 %v1008_v14 }
  0xe6   : > { %821 = vmatmul.mubr.bf16.gmra.mrb[4].mxu0 %v1009_v15  ;;  %829 = vmatmul.mubr.bf16.gmra.mrb[4].mxu1 %v1010_v16 }
 0x1b1   : > { %v818_v21 = vpop.f32.mrb[0].mxu0  ;;  %v826_v22 = vpop.f32.mrb[0].mxu1 }
 0x1b2   : > { %v576_v25 = vadd.f32 %v818_v21, %v335_v17  ;;  %v584_v26 = vadd.f32 %v826_v22, %v343_v18  ;;  %v511_v27 = vpop.f32.mrb[1].mxu0  ;;  %v543_v28 = vpop.f32.mrb[1].mxu1 }
 0x1b3   : > { %v574_v31 = vadd.f32 %v511_v27, %v333_v19  ;;  %v582_v32 = vadd.f32 %v543_v28, %v341_v20  ;;  %v819_v33 = vpop.f32.mrb[2].mxu0  ;;  %v827_v34 = vpop.f32.mrb[2].mxu1 }
 0x1b4   : > { %592 = vst [vmem:[%s1587_s17 + $0x10] sm:$0xff] %v576_v25  ;;  %600 = vst [vmem:[%s1587_s17 + $0x50] sm:$0xff] %v584_v26  ;;  %v577_v35 = vadd.f32 %v819_v33, %v336_v23  ;;  %v585_v36 = vadd.f32 %v827_v34, %v344_v24  ;;  %v514_v37 = vpop.f32.mrb[3].mxu0  ;;  %v546_v38 = vpop.f32.mrb[3].mxu1 }
 0x1b5   : > { %590 = vst [vmem:[%s1587_s17] sm:$0xff] %v574_v31  ;;  %598 = vst [vmem:[%s1587_s17 + $0x40] sm:$0xff] %v582_v32  ;;  %v575_v39 = vadd.f32 %v514_v37, %v334_v29  ;;  %v583_v40 = vadd.f32 %v546_v38, %v342_v30 }
 0x1b6   : > { %593 = vst [vmem:[%s1587_s17 + $0x18] sm:$0xff] %v577_v35  ;;  %601 = vst [vmem:[%s1587_s17 + $0x58] sm:$0xff] %v585_v36 }
 0x1b7   : > { %591 = vst [vmem:[%s1587_s17 + $0x8] sm:$0xff] %v575_v39  ;;  %599 = vst [vmem:[%s1587_s17 + $0x48] sm:$0xff] %v583_v40 }
 0x1b9   : > { %v822_v45 = vpop.f32.mrb[4].mxu0  ;;  %v830_v46 = vpop.f32.mrb[4].mxu1 }
 0x1ba   : > { %v580_v49 = vadd.f32 %v822_v45, %v339_v41  ;;  %v588_v50 = vadd.f32 %v830_v46, %v347_v42  ;;  %v527_v51 = vpop.f32.mrb[5].mxu0  ;;  %v559_v52 = vpop.f32.mrb[5].mxu1 }
 0x1bb   : > { %v578_v55 = vadd.f32 %v527_v51, %v337_v43  ;;  %v586_v56 = vadd.f32 %v559_v52, %v345_v44  ;;  %v823_v57 = vpop.f32.mrb[6].mxu0  ;;  %v831_v58 = vpop.f32.mrb[6].mxu1 }
 0x1bc   : > { %596 = vst [vmem:[%s1587_s17 + $0x30] sm:$0xff] %v580_v49  ;;  %604 = vst [vmem:[%s1587_s17 + $0x70] sm:$0xff] %v588_v50  ;;  %v581_v59 = vadd.f32 %v823_v57, %v340_v47  ;;  %v589_v60 = vadd.f32 %v831_v58, %v348_v48  ;;  %v530_v61 = vpop.f32.mrb[7].mxu0  ;;  %v562_v62 = vpop.f32.mrb[7].mxu1 }
 0x1bd   : > { %594 = vst [vmem:[%s1587_s17 + $0x20] sm:$0xff] %v578_v55  ;;  %602 = vst [vmem:[%s1587_s17 + $0x60] sm:$0xff] %v586_v56  ;;  %v579_v63 = vadd.f32 %v530_v61, %v338_v53  ;;  %v587_v0 = vadd.f32 %v562_v62, %v346_v54 }
 0x1be   : > { %597 = vst [vmem:[%s1587_s17 + $0x38] sm:$0xff] %v581_v59  ;;  %605 = vst [vmem:[%s1587_s17 + $0x78] sm:$0xff] %v589_v60 }
 0x1bf   : > { %595 = vst [vmem:[%s1587_s17 + $0x28] sm:$0xff] %v579_v63  ;;  %603 = vst [vmem:[%s1587_s17 + $0x68] sm:$0xff] %v587_v0 }
 0x1c0 PF: > { %s1793_s14 = sld [smem:[#allocation20_spill]]  ;;  %s1794_s29 = sld [smem:[#allocation27_spill]] }
 0x1c1   : > { %s621_s3 = sshll.u32 %s1587_s17, 4  ;;  %s1667_s24 = scalar_lea.sflag [#allocation7], %s285_s16  ;;  %s1663_s3 = int_to_ptr.vmem [resolvable:$true] %s621_s3 }
 0x1c2   : > { %s1093_s2 = scalar_lea.vmem %s1663_s3, 2048  ;;  %p1795_p10 = scmp.ne.s32.totalorder %s1779_s5, 0 }
 0x1c3   : > { %p1094_p8 = scmp.ne.s32.totalorder %s1663_s3, %s1093_s2  ;;  %s1255_s25 = smov [#allocation10]  }
 0x1c4   : > { %s1097_s4 = sshll.u32 %s1255_s25, 4  ;;  %s1098_s4 = int_to_ptr.vmem [resolvable:$false] %s1097_s4 }
 0x1c5   : > { %p1095_p7 = pnand %p1094_p8, %p1795_p10  ;;  %s1099_s28 = scalar_lea.vmem %s1098_s4, 4096 }
 0x1c6   : > { %s783_s23 = sshll.u32 %s1793_s14, 11  ;;  %p1100_p5 = scmp.lt.s32.totalorder %s1663_s3, %s1098_s4 }
 0x1c7   : > { %s1660_s13 = scalar_lea.hbm %s1794_s29, %s783_s23  ;;  %p1096_p2 = pneg %p1095_p7 }
 0x1c8   : > { %p1101_p3 = scmp.lt.s32.totalorder %s1099_s28, %s1093_s2 }
 0x1ca   : > { %p1102_p13 = por %p1101_p3, %p1100_p5 }
 0x1cc   : > { %p1103_p12 = pnand %p1102_p13, %p1096_p2 }
 0x1ce   : > { %1106 = shalt.err (!%p1103_p12)
}
 0x1cf   : > { %s1107_s16 = scalar_lea.hbm %s1660_s13, 2048  ;;  %s1111_s26 = scalar_lea.hbm %s1794_s29, 8192 }
 0x1d0   : > { %p1108_p11 = scmp.ne.s32.totalorder %s1660_s13, %s1107_s16  ;;  %p1112_p6 = scmp.lt.u32.totalorder %s1660_s13, %s1794_s29 }
 0x1d1   : > { %p1113_p9 = scmp.lt.u32.totalorder %s1111_s26, %s1107_s16  ;;  %p1115_p8 = scmp.lt.u32.totalorder %s1107_s16, %s1660_s13 }
 0x1d2   : > { %p1109_p4 = pnand %p1108_p11, %p1795_p10 }
 0x1d3   : > { %p1114_p0 = por %p1113_p9, %p1112_p6 }
 0x1d4   : > { %p1110_p1 = pneg %p1109_p4 }
 0x1d5   : > { %p1116_p7 = por %p1115_p8, %p1114_p0 }
 0x1d7   : > { %p1117_p2 = pnand %p1116_p7, %p1110_p1 }
 0x1d9   : > { %1120 = shalt.err (!%p1117_p2)
}
 0x1da   : > { %s1256_s23 = smov 128   ;;  %s1257_s19 = smov 8  }
 0x1db   : > { %856 = dma.vmem_to_hbm [thread:$0]  (%p1795_p10), %s1663_s3, 2048, %s1660_s13, %s1667_s24, %s1256_s23, %s1256_s23, %s1257_s19  }
 0x1dc PF: > { %p874_p5 = scmp.ge.s32.totalorder %s1245_s15, 2  ;;  %s636_s12 = sand.u32 1, %s1193_s0  }
 0x1dd   : > { %p1796_p3 = scmp.ne.s32.totalorder %s1780_s20, 0  ;;  %s637_s2 = scalar_lea.sflag [#allocation7], %s636_s12 }
 0x1df   : > { %p870_p13 = pnand %p874_p5, %p1796_p3 }
 0x1e1   : > { %1188 = dma.done.wait (!%p870_p13), %s637_s2, 2048  }
 0x1e2   : > { %1190 = vsyncadd (!%p870_p13), %s637_s2, 4294965248  ;;  %s31_s15 = sadd.s32 1, %s1245_s15   ;;  %s1798_s20 = sld [smem:[#allocation21_spill]] }
 0x1e3   : > { %p1696_p12 = scmp.ge.s32.totalorder %s31_s15, 14   ;;  %s1799_s12 = sld [smem:[#allocation22_spill]] }
 0x1e4   : > { %s1800_s13 = sld [smem:[#allocation23_spill]]  ;;  %s1801_s14 = sld [smem:[#allocation24_spill]] }
 0x1e5   : > { %s1802_s0 = smov %s1197_s1  ;;  %s1803_s1 = smov %s1201_s30 }
 0x1e6   : > { %s1804_s30 = smov %s1404_s22  ;;  %s1805_s5 = smov %s1209_s6 }
 0x1e7   : > { %s1806_s6 = smov %s1213_s7  ;;  %s1807_s7 = smov %s1511_s21 }
 0x1e8   : > { %s1808_s8 = smov %s1221_s9  ;;  %s1809_s9 = smov %s1225_s10 }
 0x1e9   : > { %s1810_s10 = smov %s1413_s11  ;;  %s1811_s11 = smov %s1798_s20 }
 0x1ea   :  { %30 = sbr.rel (!%p1696_p12) target bundleno = 35 (0x23), region = 94 }
 0x1f1   :  { %642 = vsyncpa [#allocation6], 1 }
 0x1f2   :  { %644 = vsyncpa [#allocation6 + $0x1], 1 }
 0x1f3   :  { %645 = vsyncpa [#allocation9], 1 }
 0x1f4   :  { %647 = vsyncpa [#allocation9 + $0x1], 1 }
 0x1f5   :  { %648 = vsyncpa [#allocation7], 1 }
 0x1f6   :  { %650 = vsyncpa [#allocation7 + $0x1], 1 }

</bundles_post_ra>
